<compile_context>
chip_gen: v7x
topology: tpu7x:2x2x1
jax: 0.10.0
libtpu: 0.0.40
codegen_flags: <defaults>
</compile_context>

<pallas_src>
import functools

import jax
import jax.numpy as jnp
from jax import lax
from jax.experimental import pallas as pl
from jax.experimental.pallas import tpu as pltpu


# ---------------------------------------------------------------------------
# Kernel: one batch element per grid step.
# ---------------------------------------------------------------------------
def _basic_block_kernel(x_ref, wb_ref, b_ref, out_ref, *, H, WC, mxu_dtype):
    """x_ref:   (H, WC)        lane-dense activations for one batch element (f32)
       wb_ref:  (2, 3*WC, WC)  block-banded conv weights, BN scale folded (bf16)
       b_ref:   (2, 1, WC)     folded BN biases (f32)
       out_ref: (H, WC)        output (f32)"""
    x = x_ref[...]                                            # (H, WC) f32
    zrow = jnp.zeros((1, WC), jnp.float32)

    def conv3x3(act, widx):
        # 3x3 / stride-1 / pad-1 conv as a single (H, 3*WC) x (3*WC, WC)
        # matmul.  H padding = the two zero halo rows built in registers;
        # W padding is implicit in the band structure of wb; the three ky
        # taps are concatenated along K so the MXU sees K = 3*WC.
        pad = jnp.concatenate([zrow, act, zrow], axis=0)      # (H+2, WC) regs
        lhs = jnp.concatenate([pad[dy:dy + H, :] for dy in range(3)],
                              axis=-1).astype(mxu_dtype)      # (H, 3*WC)
        return jnp.dot(lhs, wb_ref[widx],
                       preferred_element_type=jnp.float32)    # (H, WC) f32

    # conv1 (+ folded bn1 scale) + bias + relu  (elementwise kept f32)
    h = jnp.maximum(conv3x3(x, 0) + b_ref[0], 0.0)
    # conv2 (+ folded bn2 scale) + bias + residual + relu (residual = x, regs)
    y = conv3x3(h, 1) + b_ref[1] + x
    out_ref[...] = jnp.maximum(y, 0.0)


# ---------------------------------------------------------------------------
# One-time (per layer) parameter preparation -- hoisted out of the call path.
# ---------------------------------------------------------------------------
def make_basic_block_params(w1, bn1, w2, bn2, W, *, eps=1e-5,
                            mxu_dtype=jnp.bfloat16):
    """Fold BN into the conv weights and build the (3*WC, WC) block-banded
    matrices.  Depends only on layer parameters (not activations): call once
    and reuse across forward passes."""
    C = w1.shape[0]
    WC = W * C
    assert w1.shape == (C, C, 3, 3) and w2.shape == (C, C, 3, 3), \
        "BasicBlock path implemented: stride=1, planes==inplanes, 3x3 kernels"
    assert WC % 128 == 0, "lane-dense layout needs W*C to be a multiple of 128"

    def fold(bn):
        s = bn['gamma'] / jnp.sqrt(bn['running_var'] + eps)
        b = bn['beta'] - bn['running_mean'] * s
        return s.astype(jnp.float32), b.astype(jnp.float32)

    def banded(w, s):
        # Wb[dy*WC + (w+dx-1)*C + ci, w*C + co] = (w * bn_scale)[co, ci, dy, dx]
        # Out-of-range kx taps simply have no band (implicit W zero padding).
        w_eff = w.astype(jnp.float32) * s[:, None, None, None]   # (Co,Ci,3,3)
        wk = jnp.transpose(w_eff, (2, 3, 1, 0))                  # (ky,kx,Ci,Co)
        taps = [sum(jnp.kron(jnp.eye(W, k=1 - dx, dtype=jnp.float32), wk[dy, dx])
                    for dx in range(3))
                for dy in range(3)]
        return jnp.concatenate(taps, axis=0)                     # (3*WC, WC)

    s1, b1 = fold(bn1)
    s2, b2 = fold(bn2)
    wb = jnp.stack([banded(w1, s1), banded(w2, s2)]).astype(mxu_dtype)
    bias = jnp.stack([jnp.tile(b1, W), jnp.tile(b2, W)]).reshape(2, 1, WC)
    return dict(wb=wb, bias=bias, W=W, C=C, mxu_dtype=mxu_dtype)


# ---------------------------------------------------------------------------
# Lane-dense entry point: (N, H, W*C) in -> (N, H, W*C) out.  Stacked blocks
# should call this directly so activations never leave the lane-dense layout.
# ---------------------------------------------------------------------------
def basic_block_lanedense(x_ld, params):
    N, H, WC = x_ld.shape
    wb, bias = params['wb'], params['bias']
    assert WC == wb.shape[-1] and WC % 128 == 0 and H % 8 == 0, \
        "kernel assumes lane-dense W*C (multiple of 128) and H multiple of 8"
    # TODO(synk): stride>1 / downsample / planes!=inplanes BasicBlock variants
    # are not implemented (the reference forward uses stride=1, downsample=None).

    kernel = functools.partial(_basic_block_kernel, H=H, WC=WC,
                               mxu_dtype=params['mxu_dtype'])
    flops = 2 * 2 * (N * H) * (3 * WC) * WC            # two convs
    bytes_accessed = (2 * N * H * WC * 4                # x in + out (f32)
                      + wb.size * wb.dtype.itemsize     # banded weights
                      + bias.size * 4)

    return pl.pallas_call(
        kernel,
        out_shape=jax.ShapeDtypeStruct((N, H, WC), jnp.float32),
        grid_spec=pltpu.PrefetchScalarGridSpec(
            num_scalar_prefetch=0,
            grid=(N,),                                   # parallel batch axis
            in_specs=[
                pl.BlockSpec((None, H, WC), lambda n: (n, 0, 0)),    # activations
                pl.BlockSpec((2, 3 * WC, WC), lambda n: (0, 0, 0)),  # weights (VMEM-resident)
                pl.BlockSpec((2, 1, WC), lambda n: (0, 0, 0)),       # biases  (VMEM-resident)
            ],
            out_specs=pl.BlockSpec((None, H, WC), lambda n: (n, 0, 0)),
        ),
        compiler_params=pltpu.CompilerParams(
            dimension_semantics=("parallel",)),
        cost_estimate=pl.CostEstimate(flops=flops, transcendentals=0,
                                      bytes_accessed=bytes_accessed),
    )(x_ld, wb, bias)


# ---------------------------------------------------------------------------
# NCHW convenience wrapper (layout conversion paid once, for the test).
# ---------------------------------------------------------------------------
def basic_block(x_nchw, params):
    N, C, H, W = x_nchw.shape
    assert C == params['C'] and W == params['W']
    x_ld = jnp.transpose(x_nchw, (0, 2, 3, 1)).astype(jnp.float32).reshape(N, H, W * C)
    out_ld = basic_block_lanedense(x_ld, params)
    return jnp.transpose(out_ld.reshape(N, H, W, C), (0, 3, 1, 2))


def _reference(x_nchw, w1, bn1, w2, bn2, eps=1e-5):
    """Pure-JAX NCHW reference mirroring the PyTorch forward (BN in eval)."""
    def conv(x, w):
        return lax.conv_general_dilated(
            x, w, window_strides=(1, 1), padding=((1, 1), (1, 1)),
            dimension_numbers=('NCHW', 'OIHW', 'NCHW'))

    def bn(x, p):
        s = p['gamma'] / jnp.sqrt(p['running_var'] + eps)
        b = p['beta'] - p['running_mean'] * s
        return x * s[None, :, None, None] + b[None, :, None, None]

    out = jax.nn.relu(bn(conv(x_nchw, w1), bn1))
    out = bn(conv(out, w2), bn2)
    return jax.nn.relu(out + x_nchw)


if __name__ == "__main__":
    # Small shapes: inplanes = planes = 8, stride = 1, downsample = None.
    # (C=8, W=16 makes W*C = 128 = exactly one lane width.)
    N, C, H, W = 2, 8, 16, 16

    key = jax.random.PRNGKey(0)
    k_x, k_w1, k_w2, k_g1, k_b1, k_g2, k_b2, k_m1, k_v1, k_m2, k_v2 = \
        jax.random.split(key, 11)

    x = jax.random.normal(k_x, (N, C, H, W), jnp.float32)
    w1 = 0.1 * jax.random.normal(k_w1, (C, C, 3, 3), jnp.float32)
    w2 = 0.1 * jax.random.normal(k_w2, (C, C, 3, 3), jnp.float32)

    bn1 = dict(
        gamma=1.0 + 0.1 * jax.random.normal(k_g1, (C,), jnp.float32),
        beta=0.1 * jax.random.normal(k_b1, (C,), jnp.float32),
        running_mean=0.1 * jax.random.normal(k_m1, (C,), jnp.float32),
        running_var=1.0 + 0.1 * jax.random.uniform(k_v1, (C,), jnp.float32),
    )
    bn2 = dict(
        gamma=1.0 + 0.1 * jax.random.normal(k_g2, (C,), jnp.float32),
        beta=0.1 * jax.random.normal(k_b2, (C,), jnp.float32),
        running_mean=0.1 * jax.random.normal(k_m2, (C,), jnp.float32),
        running_var=1.0 + 0.1 * jax.random.uniform(k_v2, (C,), jnp.float32),
    )

    # Parameter prep is done ONCE per layer (hoisted out of the call path).
    params_bf16 = make_basic_block_params(w1, bn1, w2, bn2, W)                      # production
    params_f32 = make_basic_block_params(w1, bn1, w2, bn2, W, mxu_dtype=jnp.float32)  # exact check

    out = basic_block(x, params_bf16)
    out_f32 = basic_block(x, params_f32)
    out, out_f32 = jax.block_until_ready((out, out_f32))

    ref = _reference(x, w1, bn1, w2, bn2)
    assert out.shape == (N, C, H, W)
    # f32-MXU variant matches tightly (validates the banded-conv math itself).
    assert jnp.allclose(out_f32, ref, rtol=1e-3, atol=1e-3), \
        f"f32 path max abs err {jnp.max(jnp.abs(out_f32 - ref))}"
    # bf16-MXU production path: bf16 inputs, f32 accumulate -> looser tolerance.
    assert jnp.allclose(out, ref, rtol=2e-2, atol=2e-2), \
        f"bf16 path max abs err {jnp.max(jnp.abs(out - ref))}"

    print("KERNEL_OK")
</pallas_src>

<mosaic_0001>
module attributes {stable_mosaic.version = 11 : i64} {
  func.func @_basic_block_kernel(%arg0: i32, %arg1: memref<1x16x128xf32, #tpu.memory_space<vmem>>, %arg2: memref<2x384x128xbf16, #tpu.memory_space<vmem>>, %arg3: memref<2x1x128xf32, #tpu.memory_space<vmem>>, %arg4: memref<1x16x128xf32, #tpu.memory_space<vmem>>) attributes {dimension_semantics = [#tpu.dimension_semantics<parallel>], iteration_bounds = array<i64: 2>, scalar_prefetch = 0 : i64, scratch_operands = 0 : i64, tpu.core_type = #tpu.core_type<tc>, window_params = [{transform_indices = @transform_0, window_bounds = array<i64: 1, 16, 128>}, {pipeline_mode = #tpu.pipeline_mode<synchronous>, transform_indices = @transform_1, window_bounds = array<i64: 2, 384, 128>}, {pipeline_mode = #tpu.pipeline_mode<synchronous>, transform_indices = @transform_2, window_bounds = array<i64: 2, 1, 128>}, {transform_indices = @transform_3, window_bounds = array<i64: 1, 16, 128>}]} {
    %c0 = arith.constant 0 : index
    %c0_0 = arith.constant 0 : index
    %c0_1 = arith.constant 0 : index
    %0 = vector.load %arg1[%c0, %c0_0, %c0_1] : memref<1x16x128xf32, #tpu.memory_space<vmem>>, vector<1x16x128xf32>
    %1 = vector.shape_cast %0 : vector<1x16x128xf32> to vector<16x128xf32>
    %cst = arith.constant 0.000000e+00 : f32
    %2 = vector.broadcast %cst : f32 to vector<1x128xf32>
    %3 = tpu.concatenate %2, %1, %2 in 0 : vector<1x128xf32>, vector<16x128xf32>, vector<1x128xf32> -> vector<18x128xf32>
    %4 = vector.extract_strided_slice %3 {offsets = [0, 0], sizes = [16, 128], strides = [1, 1]} : vector<18x128xf32> to vector<16x128xf32>
    %5 = vector.extract_strided_slice %3 {offsets = [1, 0], sizes = [16, 128], strides = [1, 1]} : vector<18x128xf32> to vector<16x128xf32>
    %6 = vector.extract_strided_slice %3 {offsets = [2, 0], sizes = [16, 128], strides = [1, 1]} : vector<18x128xf32> to vector<16x128xf32>
    %7 = tpu.concatenate %4, %5, %6 in 1 : vector<16x128xf32>, vector<16x128xf32>, vector<16x128xf32> -> vector<16x384xf32>
    %8 = arith.truncf %7 : vector<16x384xf32> to vector<16x384xbf16>
    %c0_2 = arith.constant 0 : index
    %c0_3 = arith.constant 0 : index
    %c0_4 = arith.constant 0 : index
    %9 = vector.load %arg2[%c0_2, %c0_3, %c0_4] : memref<2x384x128xbf16, #tpu.memory_space<vmem>>, vector<1x384x128xbf16>
    %10 = vector.shape_cast %9 : vector<1x384x128xbf16> to vector<384x128xbf16>
    %cst_5 = arith.constant dense<0.000000e+00> : vector<16x128xf32>
    %11 = tpu.matmul %8, %10, %cst_5 {dimension_numbers = #tpu.dot_dimension_numbers<[1], [0], [0], [1], [0, 0, 1, 1], [], []>} : vector<16x384xbf16>, vector<384x128xbf16>, vector<16x128xf32> -> vector<16x128xf32>
    %c0_6 = arith.constant 0 : index
    %c0_7 = arith.constant 0 : index
    %c0_8 = arith.constant 0 : index
    %12 = vector.load %arg3[%c0_6, %c0_7, %c0_8] : memref<2x1x128xf32, #tpu.memory_space<vmem>>, vector<1x1x128xf32>
    %13 = vector.shape_cast %12 : vector<1x1x128xf32> to vector<1x128xf32>
    %14 = vector.broadcast %13 : vector<1x128xf32> to vector<16x128xf32>
    %15 = arith.addf %11, %14 : vector<16x128xf32>
    %cst_9 = arith.constant 0.000000e+00 : f32
    %16 = vector.broadcast %cst_9 : f32 to vector<16x128xf32>
    %17 = arith.maximumf %15, %16 : vector<16x128xf32>
    %18 = tpu.concatenate %2, %17, %2 in 0 : vector<1x128xf32>, vector<16x128xf32>, vector<1x128xf32> -> vector<18x128xf32>
    %19 = vector.extract_strided_slice %18 {offsets = [0, 0], sizes = [16, 128], strides = [1, 1]} : vector<18x128xf32> to vector<16x128xf32>
    %20 = vector.extract_strided_slice %18 {offsets = [1, 0], sizes = [16, 128], strides = [1, 1]} : vector<18x128xf32> to vector<16x128xf32>
    %21 = vector.extract_strided_slice %18 {offsets = [2, 0], sizes = [16, 128], strides = [1, 1]} : vector<18x128xf32> to vector<16x128xf32>
    %22 = tpu.concatenate %19, %20, %21 in 1 : vector<16x128xf32>, vector<16x128xf32>, vector<16x128xf32> -> vector<16x384xf32>
    %23 = arith.truncf %22 : vector<16x384xf32> to vector<16x384xbf16>
    %c1 = arith.constant 1 : index
    %c0_10 = arith.constant 0 : index
    %c0_11 = arith.constant 0 : index
    %24 = vector.load %arg2[%c1, %c0_10, %c0_11] : memref<2x384x128xbf16, #tpu.memory_space<vmem>>, vector<1x384x128xbf16>
    %25 = vector.shape_cast %24 : vector<1x384x128xbf16> to vector<384x128xbf16>
    %cst_12 = arith.constant dense<0.000000e+00> : vector<16x128xf32>
    %26 = tpu.matmul %23, %25, %cst_12 {dimension_numbers = #tpu.dot_dimension_numbers<[1], [0], [0], [1], [0, 0, 1, 1], [], []>} : vector<16x384xbf16>, vector<384x128xbf16>, vector<16x128xf32> -> vector<16x128xf32>
    %c1_13 = arith.constant 1 : index
    %c0_14 = arith.constant 0 : index
    %c0_15 = arith.constant 0 : index
    %27 = vector.load %arg3[%c1_13, %c0_14, %c0_15] : memref<2x1x128xf32, #tpu.memory_space<vmem>>, vector<1x1x128xf32>
    %28 = vector.shape_cast %27 : vector<1x1x128xf32> to vector<1x128xf32>
    %29 = vector.broadcast %28 : vector<1x128xf32> to vector<16x128xf32>
    %30 = arith.addf %26, %29 : vector<16x128xf32>
    %31 = arith.addf %30, %1 : vector<16x128xf32>
    %cst_16 = arith.constant 0.000000e+00 : f32
    %32 = vector.broadcast %cst_16 : f32 to vector<16x128xf32>
    %33 = arith.maximumf %31, %32 : vector<16x128xf32>
    %c0_17 = arith.constant 0 : index
    %c0_18 = arith.constant 0 : index
    %c0_19 = arith.constant 0 : index
    %34 = vector.load %arg4[%c0_17, %c0_18, %c0_19] : memref<1x16x128xf32, #tpu.memory_space<vmem>>, vector<1x16x128xf32>
    %35 = vector.shape_cast %34 : vector<1x16x128xf32> to vector<16x128xf32>
    %36 = vector.shape_cast %33 : vector<16x128xf32> to vector<1x16x128xf32>
    tpu.vector_store %arg4[%c0_17, %c0_18, %c0_19], %36 {strides = array<i32>} : memref<1x16x128xf32, #tpu.memory_space<vmem>>, vector<1x16x128xf32>,
    return
  }
  func.func @transform_0(%arg0: i32) -> (i32, i32, i32) {
    %c0_i32 = arith.constant 0 : i32
    %c0_i32_0 = arith.constant 0 : i32
    %c0_i32_1 = arith.constant 0 : i32
    return %arg0, %c0_i32, %c0_i32_0 : i32, i32, i32
  }
  func.func @transform_1(%arg0: i32) -> (i32, i32, i32) {
    %c0_i32 = arith.constant 0 : i32
    %c0_i32_0 = arith.constant 0 : i32
    %c0_i32_1 = arith.constant 0 : i32
    %c0_i32_2 = arith.constant 0 : i32
    return %c0_i32, %c0_i32_0, %c0_i32_1 : i32, i32, i32
  }
  func.func @transform_2(%arg0: i32) -> (i32, i32, i32) {
    %c0_i32 = arith.constant 0 : i32
    %c0_i32_0 = arith.constant 0 : i32
    %c0_i32_1 = arith.constant 0 : i32
    %c0_i32_2 = arith.constant 0 : i32
    return %c0_i32, %c0_i32_0, %c0_i32_1 : i32, i32, i32
  }
  func.func @transform_3(%arg0: i32) -> (i32, i32, i32) {
    %c0_i32 = arith.constant 0 : i32
    %c0_i32_0 = arith.constant 0 : i32
    %c0_i32_1 = arith.constant 0 : i32
    return %arg0, %c0_i32, %c0_i32_0 : i32, i32, i32
  }
}

</mosaic_0001>

<bundles_post_ra>
// kernel: tpu_custom_call.1
= control target key start
LH: loop header
LB: loop body
LE: loop exit
PB: predicated region body
PF: predicated region fallthrough
CT: control target
= control target key end

     0   :  { %8 = vsyncpa [#allocation3], 0  ;;  %s1664_s0 = inlined_call_operand.hbm [shape: f32[2,16,128], index: 0, kind: input, shape index: {}]   ;;  %s1665_s1 = inlined_call_operand.hbm [shape: bf16[2,384,128], index: 1, kind: input, shape index: {}]   ;;  %s1666_s2 = inlined_call_operand.vmem [shape: f32[2,1,128], index: 2, kind: input, shape index: {}]   ;;  %s1667_s3 = inlined_call_operand.hbm [shape: f32[2,16,128], index: 3, kind: output, shape index: {}]  }
   0x1   :  { %10 = vsyncpa [#allocation3 + $0x1], 0 }
   0x2   :  { %11 = vsyncpa [#allocation6], 0 }
   0x3   :  { %12 = vsyncpa [#allocation4], 0 }
   0x4   :  { %14 = vsyncpa [#allocation4 + $0x1], 0  ;;  %s1392_s12 = smov 0   ;;  %s1394_s13 = smov 0  }
   0x5   :  { %s1396_s14 = smov 0   ;;  %s1398_s15 = smov 0  }
   0x6 LB: > { %s1413_s16 = sadd.s32 4294967295, %s1358_s15   ;;  %s937_s17 = sadd.s32 4294967294, %s1358_s15   ;;  %s1358_s15 = sphi %s1398_s15, %s1691_s15   ;;  %s1354_s14 = sphi %s1396_s14, %s1690_s14   ;;  %s1350_s13 = sphi %s1394_s13, %s1689_s13   ;;  %s1346_s12 = sphi %s1392_s12, %s1688_s12  }
   0x7   : > { %p40_p0 = scmp.ne.s32.totalorder %s1350_s13, %s1346_s12  ;;  %p1668_p1 = scmp.eq.s32.totalorder %s1413_s16, 0 }
   0x8   : > { %p112_p3 = scmp.eq.s32.totalorder %s937_s17, 1  ;;  %p938_p5 = scmp.ge.s32.totalorder %s1358_s15, 1 }
   0x9   : > { %p1422_p4 = por %p1668_p1, %p40_p0  ;;  %p119_p7 = scmp.lt.s32.totalorder %s1358_s15, 3 }
   0xa   : > { %p1427_p6 = por %p112_p3, %p40_p0  ;;  %s1360_s21 = smov [#allocation5]  }
   0xb   : > { %s1671_s18 = scalar_select %p1422_p4, 1, 0 }
   0xc   : > { %s1672_s19 = scalar_select %p1427_p6, 1, 0 }
   0xd   : > { %p1432_p8 = pnand %p938_p5, %p119_p7  ;;  %s131_s22 = sshll.u32 %s1360_s21, 4  ;;  %s1436_s22 = int_to_ptr.vmem [resolvable:$true] %s131_s22 }
   0xe   : > { %s1448_s24 = sadd.s32 1, %s1358_s15   ;;  %s27_s25 = sadd.s32 1, %s1354_s14 }
   0xf   : > { %s1673_s20 = scalar_select %p1432_p8, 1, 0 }
  0x10   : > { %p1124_p9 = pneg %p1432_p8  ;;  %s24_s26 = ssub.s32 %s1358_s15, %s1448_s24 }
  0x11   : > { %s1230_s29 = scalar_lea.hbm %s1665_s1, 6144 }
  0x12   : > { %p1443_p11 = pnand %p1124_p9, %p1668_p1  ;;  %p1231_p12 = scmp.ne.s32.totalorder %s1665_s1, %s1230_s29 }
  0x13   : > { %p1237_p5 = scmp.lt.u32.totalorder %s1230_s29, %s1665_s1 }
  0x14   : > { %p1232_p13 = pneg %p1443_p11 }
  0x16   : > { %p1233_p0 = pnand %p1232_p13, %p1231_p12 }
  0x18   : > { %p1234_p3 = pneg %p1233_p0 }
  0x1a   : > { %p1239_p7 = pnand %p1237_p5, %p1234_p3 }
  0x1c   : > { %1242 = shalt.err (!%p1239_p7)
}
  0x1d   : > { %s1243_s7 = scalar_lea.vmem %s1436_s22, 6144  ;;  %p1251_p2 = scmp.lt.s32.totalorder %s1436_s22, %s1436_s22 }
  0x1e   : > { %p1244_p9 = scmp.ne.s32.totalorder %s1436_s22, %s1243_s7  ;;  %p1252_p6 = scmp.lt.s32.totalorder %s1243_s7, %s1243_s7 }
  0x20   : > { %p1246_p10 = pnand %p1244_p9, %p1232_p13  ;;  %p1253_p4 = por %p1252_p6, %p1251_p2 }
  0x22   : > { %p1247_p1 = pneg %p1246_p10 }
  0x24   : > { %p1254_p8 = pnand %p1253_p4, %p1247_p1 }
  0x26   : > { %1257 = shalt.err (!%p1254_p8)
}
  0x27   : > { %s1361_s8 = smov 64   ;;  %s1362_s9 = smov 4  }
  0x28   : > { %1127 = dma.hbm_to_vmem [thread:$0]  (!%p1443_p11), %s1665_s1, 6144, %s1436_s22, [#allocation6], %s1361_s8, %s1361_s8, %s1362_s9  }
  0x29   : > { %p25_p2 = scmp.eq.s32.totalorder %s24_s26, 0  ;;  %p34_p1 = scmp.ne.s32.totalorder %s1354_s14, %s1350_s13 }
  0x2a   : > { %p35_p4 = scmp.eq.s32.totalorder %s1358_s15, 0  ;;  %p1137_p6 = scmp.lt.s32.totalorder %s1358_s15, 2 }
  0x2b   : > { %s1479_s17 = scalar_select %p25_p2, %s1354_s14, %s27_s25  }
  0x2c   : > { %p36_p8 = por %p35_p4, %p34_p1  ;;  %p1675_p10 = scmp.eq.s32.totalorder %s1413_s16, 1 }
  0x2d   : > { %s148_s27 = sand.u32 1, %s1354_s14   ;;  %s1012_s28 = sshll.u32 %s1358_s15, 8 }
  0x2e   : > { %p1483_p12 = por %p1675_p10, %p34_p1  ;;  %s941_s29 = sshll.u32 %s148_s27, 4 }
  0x2f   : > { %s1492_s4 = scalar_lea.hbm %s1664_s0, %s1012_s28  ;;  %s152_s22 = scalar_lea.vmem [#allocation2], %s941_s29 }
  0x30   : > { %s159_s25 = sshll.u32 %s152_s22, 4  ;;  %p1494_p11 = pnand %p1137_p6, %p36_p8  ;;  %s1498_s25 = int_to_ptr.vmem [resolvable:$true] %s159_s25 }
  0x31   : > { %s1500_s5 = scalar_lea.sflag [#allocation3], %s148_s27  ;;  %s1258_s6 = scalar_lea.hbm %s1492_s4, 256 }
  0x32   : > { %p1259_p13 = scmp.ne.s32.totalorder %s1492_s4, %s1258_s6  ;;  %p1260_p0 = pneg %p1494_p11 }
  0x33   : > { %s1263_s9 = scalar_lea.hbm %s1664_s0, 512  ;;  %p1264_p7 = scmp.lt.u32.totalorder %s1492_s4, %s1664_s0 }
  0x34   : > { %p1261_p3 = pnand %p1260_p0, %p1259_p13  ;;  %p1265_p9 = scmp.lt.u32.totalorder %s1263_s9, %s1258_s6 }
  0x35   : > { %p1267_p1 = scmp.lt.u32.totalorder %s1258_s6, %s1492_s4 }
  0x36   : > { %p1262_p5 = pneg %p1261_p3  ;;  %p1266_p2 = por %p1265_p9, %p1264_p7 }
  0x38   : > { %p1268_p4 = por %p1267_p1, %p1266_p2 }
  0x3a   : > { %p1269_p6 = pnand %p1268_p4, %p1262_p5 }
  0x3c   : > { %1272 = shalt.err (!%p1269_p6)
}
  0x3d   : > { %s1273_s27 = scalar_lea.vmem %s1498_s25, 256  ;;  %s1363_s28 = smov [#allocation2]  }
  0x3e   : > { %p1274_p8 = scmp.ne.s32.totalorder %s1498_s25, %s1273_s27  ;;  %s1278_s29 = sshll.u32 %s1363_s28, 4  ;;  %s1279_s29 = int_to_ptr.vmem [resolvable:$false] %s1278_s29 }
  0x3f   : > { %s1280_s23 = scalar_lea.vmem %s1279_s29, 512  ;;  %p1281_p3 = scmp.lt.s32.totalorder %s1498_s25, %s1279_s29 }
  0x40   : > { %p1276_p10 = pnand %p1274_p8, %p1260_p0  ;;  %p1282_p7 = scmp.lt.s32.totalorder %s1280_s23, %s1273_s27 }
  0x42   : > { %p1277_p13 = pneg %p1276_p10  ;;  %p1283_p9 = por %p1282_p7, %p1281_p3 }
  0x44   : > { %p1284_p2 = pnand %p1283_p9, %p1277_p13 }
  0x46   : > { %1287 = shalt.err (!%p1284_p2)
}
  0x47   : > { %s1364_s30 = smov 128   ;;  %s1365_s22 = smov 8  }
  0x48   : > { %1131 = dma.hbm_to_vmem [thread:$0]  (!%p1494_p11), %s1492_s4, 256, %s1498_s25, %s1500_s5, %s1364_s30, %s1364_s30, %s1365_s22  }
  0x49   : > { %p1678_p0 = scmp.ne.s32.totalorder %s1673_s20, 0 }
  0x4a   : > { %s1531_s6 = sand.u32 (!%p1678_p0), 1, %s1350_s13   ;;  %p1679_p5 = scmp.ne.s32.totalorder (!%p1678_p0), %s1671_s18, 0 }
  0x4b   : > { %171 = sbr.rel (%p1678_p0) target bundleno = 592 (0x250), region = 32  ;;  %s945_s7 = sshll.u32 (!%p1678_p0), %s1531_s6, 4 }
  0x4c   : > { %s174_s8 = scalar_lea.sflag (!%p1678_p0), [#allocation3], %s1531_s6  ;;  %s1537_s9 = scalar_lea.vmem (!%p1678_p0), [#allocation2], %s945_s7 }
  0x52   : > { %1333 = dma.done.wait (%p1679_p5), %s174_s8, 256  }
  0x53   : > { %1335 = vsyncadd (%p1679_p5), %s174_s8, 4294967040  ;;  %p1680_p11 = scmp.eq.s32.totalorder %s1413_s16, 0 }
  0x55   : > { %1337 = dma.done.wait (%p1680_p11), [#allocation6], 6144   ;;  %p1681_p1 = pmov %p1680_p11 }
  0x56   : > { %v1366_v0 = vmov 0.0   ;;  %vm1367_vm0 = vmmov 0   ;;  %v1182_v1 = vld [vmem:[#allocation5 + $0x40] sm:$0xff]   ;;  %v1185_v4 = vld [vmem:[#allocation5 + $0x48] sm:$0xff]   ;;  %v1188_v7 = vld [vmem:[#allocation5 + $0x50] sm:$0xff]   ;;  %vm209_vm1 = vcmask 1040384  }
  0x57   : > { %1339 = vsyncadd (%p1681_p1), [#allocation6], 4294961152  ;;  %1076 = vmatprep.subr.bf16.mxu1 %v1366_v0  ;;  %1092 = vmatprep.mubr.msk.bf16.mxu1 %vm1367_vm0, %v1366_v0  ;;  %v1183_v2 = vld [vmem:[#allocation5] sm:$0xff]   ;;  %v1186_v5 = vld [vmem:[#allocation5 + $0x8] sm:$0xff]   ;;  %vm220_vm3 = vcmask 1046528   ;;  %vm228_vm4 = vcmask 1045504  }
  0x58   : > { %1014 = vmatprep.subr.bf16.mxu0 %v1182_v1  ;;  %v1184_v3 = vld [vmem:[#allocation5 + $0x80] sm:$0xff]   ;;  %v1187_v6 = vld [vmem:[#allocation5 + $0x88] sm:$0xff]   ;;  %v1189_v8 = vld [vmem:[#allocation5 + $0x10] sm:$0xff]   ;;  %vm1368_vm5 = vmmov 1   ;;  %s1013_s26 = sshll.u32 %s1413_s16, 8  ;;  %s203_s5 = scalar_lea.vmem [#allocation7], %s945_s7 }
  0x59   : > { %1015 = vmatpush3.bf16.msra.mxu0 %v1183_v2  ;;  %1077 = vmatpush3.bf16.msra.mxu1 %v1184_v3  ;;  %v1190_v9 = vld [vmem:[#allocation5 + $0x90] sm:$0xff]   ;;  %v1191_v10 = vld [vmem:[#allocation5 + $0x58] sm:$0xff]   ;;  %v1194_v13 = vld [vmem:[#allocation5 + $0x60] sm:$0xff]   ;;  %s854_s10 = sshll.u32 %s203_s5, 4  ;;  %s1618_s28 = scalar_lea.hbm %s1667_s3, %s1013_s26  ;;  %s1620_s10 = int_to_ptr.vmem [resolvable:$true] %s854_s10 }
  0x5a   : > { %1016 = vmatprep.subr.bf16.mxu0 %v1185_v4  ;;  %1078 = vmatprep.subr.bf16.mxu1 %v1366_v0  ;;  %v1192_v11 = vld [vmem:[#allocation5 + $0x18] sm:$0xff]   ;;  %v1195_v14 = vld [vmem:[#allocation5 + $0x20] sm:$0xff]   ;;  %v1197_v16 = vld [vmem:[#allocation5 + $0x68] sm:$0xff]   ;;  %s841_s16 = scalar_lea.sflag [#allocation4], %s1531_s6  ;;  %s1288_s29 = scalar_lea.vmem %s1620_s10, 256 }
  0x5b   : > { %v1193_v12 = vld [vmem:[#allocation5 + $0x98] sm:$0xff]   ;;  %v1196_v15 = vld [vmem:[#allocation5 + $0xa0] sm:$0xff]   ;;  %v1198_v17 = vld [vmem:[#allocation5 + $0x28] sm:$0xff]   ;;  %p1289_p4 = scmp.ne.s32.totalorder %s1620_s10, %s1288_s29  ;;  %s1369_s23 = smov [#allocation7]  }
  0x5c   : > { %v1199_v18 = vld [vmem:[#allocation5 + $0xa8] sm:$0xff]   ;;  %v1200_v19 = vld [vmem:[#allocation5 + $0x70] sm:$0xff]   ;;  %vm1556_vm2 = vmneg %vm209_vm1  ;;  %s1292_s30 = sshll.u32 %s1369_s23, 4  ;;  %s1293_s30 = int_to_ptr.vmem [resolvable:$false] %s1292_s30 }
  0x5d   : > { %1017 = vmatpush3.bf16.msra.mxu0 %v1186_v5  ;;  %1079 = vmatpush3.bf16.msra.mxu1 %v1187_v6  ;;  %v1201_v21 = vld [vmem:[#allocation5 + $0x30] sm:$0xff]   ;;  %v1564_v23 = vld [vmem:[%s1537_s9 + $0x8] sm:$0xff]  ;;  %vm1574_vm6 = vmpackc.low %vm1368_vm5, %vm1556_vm2  ;;  %p1290_p6 = pnand %p1289_p4, %p1483_p12  ;;  %s1294_s22 = scalar_lea.vmem %s1293_s30, 512 }
  0x5e   : > { %1018 = vmatprep.subr.bf16.mxu0 %v1188_v7  ;;  %1080 = vmatprep.subr.bf16.mxu1 %v1366_v0  ;;  %v1561_v22 = vld [vmem:[%s1537_s9] sm:$0xff]  ;;  %v1203_v25 = vld [vmem:[#allocation5 + $0x78] sm:$0xff]   ;;  %v211_v27 = vrot.slane %v1564_v23, 7  ;;  %v1209_v50 = vld [vmem:[#allocation5 + $0x108] sm:$0xff]   ;;  %p1295_p10 = scmp.lt.s32.totalorder %s1620_s10, %s1293_s30  ;;  %p1296_p13 = scmp.lt.s32.totalorder %s1294_s22, %s1288_s29 }
  0x5f   : > { %v1202_v24 = vld [vmem:[#allocation5 + $0xb0] sm:$0xff]   ;;  %v210_v26 = vrot.slane %v1561_v22, 7  ;;  %v1204_v28 = vld [vmem:[#allocation5 + $0x38] sm:$0xff]   ;;  %v1206_v42 = vld [vmem:[#allocation5 + $0x100] sm:$0xff]   ;;  %p1291_p8 = pneg %p1290_p6 }
  0x60   : > { %v217_v31 = vsel %vm209_vm1, %v211_v27, 0.0  ;;  %v1205_v32 = vld [vmem:[#allocation5 + $0xb8] sm:$0xff]   ;;  %v1207_v47 = vld [vmem:[#allocation5 + $0x140] sm:$0xff]   ;;  %v1211_v51 = vld [vmem:[#allocation5 + $0xc8] sm:$0xff]   ;;  %p1297_p3 = por %p1296_p13, %p1295_p10 }
  0x61   : > { %1019 = vmatpush3.bf16.msra.mxu0 %v1189_v8  ;;  %1081 = vmatpush3.bf16.msra.mxu1 %v1190_v9  ;;  %v212_v29 = vsel %vm209_vm1, %v210_v26, %v211_v27  ;;  %v216_v30 = vsel %vm209_vm1, 0.0, %v210_v26  ;;  %v224_v35 = vrot.slane %v217_v31, 1  ;;  %v232_v37 = vrot.slane %v217_v31, 2  ;;  %v1208_v49 = vld [vmem:[#allocation5 + $0xc0] sm:$0xff]   ;;  %v1210_v52 = vld [vmem:[#allocation5 + $0x148] sm:$0xff]   ;;  %v1212_v53 = vld [vmem:[#allocation5 + $0x110] sm:$0xff]  }
  0x62   : > { %1020 = vmatprep.subr.bf16.mxu0 %v1191_v10  ;;  %1082 = vmatprep.subr.bf16.mxu1 %v1366_v0  ;;  %v221_v33 = vrot.slane %v216_v30, 1  ;;  %v222_v34 = vrot.slane %v212_v29, 1  ;;  %v229_v36 = vrot.slane %v216_v30, 2  ;;  %v230_v39 = vrot.slane %v212_v29, 2  ;;  %v1214_v54 = vld [vmem:[#allocation5 + $0xd0] sm:$0xff]   ;;  %v1215_v56 = vld [vmem:[#allocation5 + $0x118] sm:$0xff]   ;;  %p1298_p7 = pnand %p1297_p3, %p1291_p8 }
  0x63   : > { %v975_v44 = vpack.c.bf16 %v212_v29, %v210_v26  ;;  %v1213_v55 = vld [vmem:[#allocation5 + $0x150] sm:$0xff]   ;;  %v1216_v57 = vld [vmem:[#allocation5 + $0x158] sm:$0xff]   ;;  %v1218_v59 = vld [vmem:[#allocation5 + $0x120] sm:$0xff]  }
  0x64   : > { %v223_v40 = vsel %vm220_vm3, %v221_v33, %v222_v34  ;;  %v225_v41 = vsel %vm220_vm3, %v222_v34, %v224_v35  ;;  %v231_v45 = vsel %vm228_vm4, %v229_v36, %v230_v39  ;;  %v233_v46 = vsel %vm228_vm4, %v230_v39, %v232_v37  ;;  %v1217_v58 = vld [vmem:[#allocation5 + $0xd8] sm:$0xff]   ;;  %v1219_v60 = vld [vmem:[#allocation5 + $0x160] sm:$0xff]   ;;  %v1221_v62 = vld [vmem:[#allocation5 + $0x128] sm:$0xff]  }
  0x65   : > { %1021 = vmatpush3.bf16.msra.mxu0 %v1192_v11  ;;  %1083 = vmatpush3.bf16.msra.mxu1 %v1193_v12  ;;  %v237_v43 = vpack.c.bf16 %v225_v41, %v223_v40  ;;  %v238_v48 = vpack.c.bf16 %v233_v46, %v231_v45  ;;  %v1220_v61 = vld [vmem:[#allocation5 + $0xe0] sm:$0xff]   ;;  %v1222_v63 = vld [vmem:[#allocation5 + $0x168] sm:$0xff]   ;;  %v1224_v2 = vld [vmem:[#allocation5 + $0x130] sm:$0xff]  }
  0x66   : > { %1022 = vmatprep.subr.bf16.mxu0 %v1194_v13  ;;  %1084 = vmatprep.subr.bf16.mxu1 %v1366_v0  ;;  %v1223_v1 = vld [vmem:[#allocation5 + $0xe8] sm:$0xff]   ;;  %v1225_v3 = vld [vmem:[#allocation5 + $0x170] sm:$0xff]   ;;  %v1227_v5 = vld [vmem:[#allocation5 + $0x138] sm:$0xff]  }
  0x67   : > { %470 = vmatprep.mubr.bf16.mxu0 %v237_v43  ;;  %v1226_v4 = vld [vmem:[#allocation5 + $0xf0] sm:$0xff]   ;;  %v1228_v6 = vld [vmem:[#allocation5 + $0x178] sm:$0xff]   ;;  %v948_v10 = vld [vmem:[%s1666_s2] ss:$0 sm:$0xff] }
  0x68   : > { %v1229_v7 = vld [vmem:[#allocation5 + $0xf8] sm:$0xff]  }
  0x69   : > { %1023 = vmatpush3.bf16.msra.mxu0 %v1195_v14  ;;  %1085 = vmatpush3.bf16.msra.mxu1 %v1196_v15 }
  0x6a   : > { %1024 = vmatprep.subr.bf16.mxu0 %v1197_v16  ;;  %1086 = vmatprep.subr.bf16.mxu1 %v1366_v0 }
  0x6d   : > { %1025 = vmatpush3.bf16.msra.mxu0 %v1198_v17  ;;  %1087 = vmatpush3.bf16.msra.mxu1 %v1199_v18 }
  0x6e   : > { %1026 = vmatprep.subr.bf16.mxu0 %v1200_v19  ;;  %1088 = vmatprep.subr.bf16.mxu1 %v1366_v0 }
  0x71   : > { %1027 = vmatpush3.bf16.msra.mxu0 %v1201_v21  ;;  %1089 = vmatpush3.bf16.msra.mxu1 %v1202_v24 }
  0x72   : > { %1028 = vmatprep.subr.bf16.mxu0 %v1203_v25  ;;  %1090 = vmatprep.subr.bf16.mxu1 %v1366_v0 }
  0x75   : > { %1029 = vmatpush3.bf16.msra.mxu0 %v1204_v28  ;;  %1091 = vmatpush3.bf16.msra.mxu1 %v1205_v32 }
  0x76   : > { %1096 = vmatprep.subr.bf16.mxu1 %v1366_v0  ;;  %1045 = vmatprep.subr.bf16.mxu0 %v1206_v42 }
  0x78   : > { %976 = vmatmul.mubr.msk.bf16.vlgmr.msra.gmra.mrb[0].mxu0 %vm1574_vm6, %v975_v44  ;;  %1093 = vmatmul.mubr.bf16.vlgmr.msra.gmra.mrb[0].mxu1 %v238_v48  ;;  %v978_v48 = vld [vmem:[%s1666_s2 + $0x1] ss:$0 sm:$0xff] }
  0x79   : > { %1046 = vmatpush3.bf16.msra.mxu0 %v1208_v49  ;;  %1097 = vmatpush3.bf16.msra.mxu1 %v1207_v47 }
  0x7a   : > { %1047 = vmatprep.subr.bf16.mxu0 %v1209_v50  ;;  %1098 = vmatprep.subr.bf16.mxu1 %v1366_v0 }
  0x7b   : > { %1112 = vmatprep.mubr.msk.bf16.mxu1 %vm1367_vm0, %v1366_v0 }
  0x7d   : > { %1048 = vmatpush3.bf16.msra.mxu0 %v1211_v51  ;;  %1099 = vmatpush3.bf16.msra.mxu1 %v1210_v52 }
  0x7e   : > { %1049 = vmatprep.subr.bf16.mxu0 %v1212_v53  ;;  %1100 = vmatprep.subr.bf16.mxu1 %v1366_v0 }
  0x81   : > { %1050 = vmatpush3.bf16.msra.mxu0 %v1214_v54  ;;  %1101 = vmatpush3.bf16.msra.mxu1 %v1213_v55 }
  0x82   : > { %1102 = vmatprep.subr.bf16.mxu1 %v1366_v0  ;;  %1051 = vmatprep.subr.bf16.mxu0 %v1215_v56 }
  0x85   : > { %1103 = vmatpush3.bf16.msra.mxu1 %v1216_v57  ;;  %1052 = vmatpush3.bf16.msra.mxu0 %v1217_v58 }
  0x86   : > { %1104 = vmatprep.subr.bf16.mxu1 %v1366_v0  ;;  %1053 = vmatprep.subr.bf16.mxu0 %v1218_v59 }
  0x89   : > { %1105 = vmatpush3.bf16.msra.mxu1 %v1219_v60  ;;  %1054 = vmatpush3.bf16.msra.mxu0 %v1220_v61 }
  0x8a   : > { %1106 = vmatprep.subr.bf16.mxu1 %v1366_v0  ;;  %1055 = vmatprep.subr.bf16.mxu0 %v1221_v62 }
  0x8d   : > { %1107 = vmatpush3.bf16.msra.mxu1 %v1222_v63  ;;  %1056 = vmatpush3.bf16.msra.mxu0 %v1223_v1 }
  0x8e   : > { %1108 = vmatprep.subr.bf16.mxu1 %v1366_v0  ;;  %1057 = vmatprep.subr.bf16.mxu0 %v1224_v2 }
  0x91   : > { %1109 = vmatpush3.bf16.msra.mxu1 %v1225_v3  ;;  %1058 = vmatpush3.bf16.msra.mxu0 %v1226_v4 }
  0x92   : > { %1110 = vmatprep.subr.bf16.mxu1 %v1366_v0  ;;  %1059 = vmatprep.subr.bf16.mxu0 %v1227_v5 }
  0x95   : > { %1111 = vmatpush3.bf16.msra.mxu1 %v1228_v6  ;;  %1060 = vmatpush3.bf16.msra.mxu0 %v1229_v7 }
 0x14b   : > { %v1030_v8 = vpop.f32.mrb[0].mxu0  ;;  %v513_v11 = vpop.f32.mrb[0].mxu1 }
 0x14c   : > { %v1031_v9 = vpop.f32.mrb[1].mxu0  ;;  %v1094_v14 = vpop.f32.mrb[1].mxu1 }
 0x14d   : > { %v1032_v12 = vadd.f32 %v1031_v9, %v1030_v8  ;;  %v1033_v13 = vpop.f32.mrb[2].mxu0  ;;  %v516_v16 = vpop.f32.mrb[2].mxu1 }
 0x14e   : > { %v1034_v15 = vpop.f32.mrb[3].mxu0  ;;  %v1095_v18 = vpop.f32.mrb[3].mxu1 }
 0x14f   : > { %v473_v17 = vadd.f32 %v1032_v12, %v948_v10  ;;  %v1035_v0 = vadd.f32 %v1034_v15, %v1033_v13 }
 0x151   : > { %v514_v19 = vadd.f32 %v513_v11, %v473_v17  ;;  %v476_v20 = vadd.f32 %v1035_v0, %v948_v10 }
 0x153   : > { %v520_v21 = vmax.f32 %v514_v19, 0.0  ;;  %v517_v24 = vadd.f32 %v516_v16, %v476_v20 }
 0x155   : > { %v524_v25 = vrot.slane %v520_v21, 7  ;;  %v521_v26 = vmax.f32 %v517_v24, 0.0 }
 0x157   : > { %v530_v27 = vsel %vm209_vm1, 0.0, %v524_v25  ;;  %v525_v28 = vrot.slane %v521_v26, 7 }
 0x158   : > { %v534_v29 = vrot.slane %v530_v27, 1  ;;  %v541_v30 = vrot.slane %v530_v27, 2 }
 0x159   : > { %v526_v31 = vsel %vm209_vm1, %v524_v25, %v525_v28  ;;  %v531_v32 = vsel %vm209_vm1, %v525_v28, 0.0 }
 0x15a   : > { %v535_v33 = vrot.slane %v526_v31, 1  ;;  %v537_v34 = vrot.slane %v531_v32, 1  ;;  %v542_v35 = vrot.slane %v526_v31, 2  ;;  %v544_v36 = vrot.slane %v531_v32, 2 }
 0x15b   : > { %v1005_v37 = vpack.c.bf16 %v526_v31, %v524_v25 }
 0x15c   : > { %v536_v39 = vsel %vm220_vm3, %v534_v29, %v535_v33  ;;  %v538_v40 = vsel %vm220_vm3, %v535_v33, %v537_v34  ;;  %v543_v41 = vsel %vm228_vm4, %v541_v30, %v542_v35  ;;  %v545_v42 = vsel %vm228_vm4, %v542_v35, %v544_v36 }
 0x15d   : > { %v549_v43 = vpack.c.bf16 %v538_v40, %v536_v39  ;;  %v550_v44 = vpack.c.bf16 %v545_v42, %v543_v41 }
 0x15f   : > { %784 = vmatprep.mubr.bf16.mxu0 %v549_v43  ;;  %1113 = vmatmul.mubr.bf16.vlgmr.msra.gmra.mrb[4].mxu1 %v550_v44 }
 0x160   : > { %1006 = vmatmul.mubr.msk.bf16.vlgmr.msra.gmra.mrb[4].mxu0 %vm1574_vm6, %v1005_v37 }
 0x232   : > { %v827_v45 = vpop.f32.mrb[4].mxu1 }
 0x233   : > { %v1061_v46 = vpop.f32.mrb[4].mxu0  ;;  %v1114_v47 = vpop.f32.mrb[5].mxu1 }
 0x234   : > { %v1062_v49 = vpop.f32.mrb[5].mxu0  ;;  %v830_v50 = vpop.f32.mrb[6].mxu1 }
 0x235   : > { %v1063_v51 = vadd.f32 %v1062_v49, %v1061_v46  ;;  %v1064_v52 = vpop.f32.mrb[6].mxu0  ;;  %v1115_v53 = vpop.f32.mrb[7].mxu1 }
 0x236   : > { %v1065_v54 = vpop.f32.mrb[7].mxu0 }
 0x237   : > { %v787_v55 = vadd.f32 %v1063_v51, %v978_v48  ;;  %v1066_v56 = vadd.f32 %v1065_v54, %v1064_v52 }
 0x239   : > { %v828_v38 = vadd.f32 %v827_v45, %v787_v55  ;;  %v790_v57 = vadd.f32 %v1066_v56, %v978_v48 }
 0x23b   : > { %v834_v58 = vadd.f32 %v828_v38, %v1561_v22  ;;  %v831_v59 = vadd.f32 %v830_v50, %v790_v57 }
 0x23d   : > { %v836_v60 = vmax.f32 %v834_v58, 0.0  ;;  %v835_v61 = vadd.f32 %v831_v59, %v1564_v23 }
 0x23f   : > { %838 = vst [vmem:[%s203_s5] sm:$0xff] %v836_v60  ;;  %v837_v22 = vmax.f32 %v835_v61, 0.0 }
 0x241   : > { %839 = vst [vmem:[%s203_s5 + $0x8] sm:$0xff] %v837_v22 }
 0x242   : > { %1301 = shalt.err (!%p1298_p7)
}
 0x243   : > { %s1302_s7 = scalar_lea.hbm %s1618_s28, 256  ;;  %s1306_s18 = scalar_lea.hbm %s1667_s3, 512 }
 0x244   : > { %p1303_p9 = scmp.ne.s32.totalorder %s1618_s28, %s1302_s7  ;;  %p1307_p5 = scmp.lt.u32.totalorder %s1618_s28, %s1667_s3 }
 0x245   : > { %p1308_p11 = scmp.lt.u32.totalorder %s1306_s18, %s1302_s7  ;;  %p1310_p4 = scmp.lt.u32.totalorder %s1302_s7, %s1618_s28 }
 0x246   : > { %p1304_p2 = pnand %p1303_p9, %p1483_p12 }
 0x247   : > { %p1309_p1 = por %p1308_p11, %p1307_p5 }
 0x248   : > { %p1305_p0 = pneg %p1304_p2 }
 0x249   : > { %p1311_p6 = por %p1310_p4, %p1309_p1 }
 0x24b   : > { %p1312_p8 = pnand %p1311_p6, %p1305_p0 }
 0x24d   : > { %1315 = shalt.err (!%p1312_p8)
}
 0x24e   : > { %s1370_s25 = smov 128   ;;  %s1371_s26 = smov 8  }
 0x24f   : > { %1122 = dma.vmem_to_hbm [thread:$0]  (%p1483_p12), %s1620_s10, 256, %s1618_s28, %s841_s16, %s1370_s25, %s1370_s25, %s1371_s26  }
 0x250 PF: > { %s869_s5 = sand.u32 1, %s1346_s12   ;;  %p1686_p10 = scmp.ne.s32.totalorder %s1672_s19, 0 }
 0x251   : > { %p1687_p13 = scmp.ge.s32.totalorder %s1358_s15, 2  ;;  %s870_s11 = scalar_lea.sflag [#allocation4], %s869_s5 }
 0x253   : > { %p1133_p3 = pnand %p1687_p13, %p1686_p10 }
 0x255   : > { %1341 = dma.done.wait (!%p1133_p3), %s870_s11, 256  }
 0x256   : > { %1343 = vsyncadd (!%p1133_p3), %s870_s11, 4294967040  ;;  %p17_p7 = scmp.ge.s32.totalorder %s1448_s24, 4   ;;  %s1688_s12 = smov %s1350_s13 }
 0x257   : > { %s1689_s13 = smov %s1354_s14  ;;  %s1690_s14 = smov %s1479_s17 }
 0x258   : > { %s1691_s15 = smov %s1448_s24  ;;  %19 = sbr.rel (!%p17_p7) target bundleno = 6 (0x6), region = 83 }
 0x25f   :  { %875 = vsyncpa [#allocation3], 1 }
 0x260   :  { %877 = vsyncpa [#allocation3 + $0x1], 1 }
 0x261   :  { %878 = vsyncpa [#allocation6], 1 }
 0x262   :  { %879 = vsyncpa [#allocation4], 1 }
 0x263   :  { %881 = vsyncpa [#allocation4 + $0x1], 1 }

</bundles_post_ra>
